<compile_context>
chip_gen: v7x
topology: tpu7x:2x2x1
jax: 0.10.0
libtpu: 0.0.40
codegen_flags: <defaults>
</compile_context>

<pallas_src>
import jax
import jax.numpy as jnp
from jax.experimental import pallas as pl
from jax.experimental.pallas import tpu as pltpu

_FAST_PATH_BYTES = 256 * 1024        # below this per-input size, skip pallas
_MAX_TILE_BYTES = 4 * 1024 * 1024    # ~85%+ of HBM roofline well before this


def _min2_kernel(a_ref, b_ref, o_ref):
    o_ref[...] = jnp.minimum(a_ref[...], b_ref[...])


def _min3_kernel(a_ref, b_ref, c_ref, o_ref):
    o_ref[...] = jnp.minimum(jnp.minimum(a_ref[...], b_ref[...]), c_ref[...])


def _round_down(x, m):
    return (x // m) * m


def _round_up(x, m):
    return ((x + m - 1) // m) * m


def _vmem_budget_bytes():
    """~75% of physical VMEM (leaves headroom); conservative fallback."""
    try:
        cap = int(pltpu.get_tpu_info().vmem_capacity_bytes)
    except Exception:
        cap = 64 * 1024 * 1024  # v7x per-TC size: safe lower bound everywhere
    return int(cap * 0.75)


def _pick_block_rows(M, D, itemsize, n_inputs):
    """Choose the batch-row tile so each block is large but VMEM-safe."""
    # minimum sublane tile for the dtype: 8 (f32) / 16 (bf16) / 32 (int8/fp8)
    sublane = max(8, 32 // max(itemsize, 1))
    if M <= sublane:
        return M  # a block equal to the full dim is always a legal layout

    n_streams = n_inputs + 1                       # inputs + output
    budget = _vmem_budget_bytes()
    tile_bytes = min(budget // (2 * n_streams),    # each stream double-buffered
                     _MAX_TILE_BYTES)

    row_bytes = max(D * itemsize, 1)
    bm = max(tile_bytes // row_bytes, 1)
    bm = min(bm, M)

    # Keep >= 2 blocks so v7x's two TensorCores each take half the batch.
    if bm >= M:
        bm = _round_up(pl.cdiv(M, 2), sublane)

    bm = max(_round_down(bm, sublane), sublane)
    return min(bm, M)


def _tiled_min(tensors):
    """Elementwise min over 2 or 3 same-shaped (M, D) tensors via Pallas."""
    a = tensors[0]
    M, D = a.shape
    itemsize = jnp.dtype(a.dtype).itemsize

    # Tiny-input fast path: kernel launch + pipeline setup would dominate.
    if M * D * itemsize < _FAST_PATH_BYTES:
        out = tensors[0]
        for t in tensors[1:]:
            out = jnp.minimum(out, t)
        return out

    k = len(tensors)
    bm = _pick_block_rows(M, D, itemsize, k)
    grid = (pl.cdiv(M, bm),)  # ragged last block is padded; min is pad-safe

    # Full-D block keeps the output lane-dense (unmasked vector stores).
    spec = pl.BlockSpec((bm, D), lambda i: (i, 0))
    kernel = _min2_kernel if k == 2 else _min3_kernel

    cost = pl.CostEstimate(
        flops=M * D * (k - 1),
        transcendentals=0,
        bytes_accessed=(k + 1) * M * D * itemsize,
    )

    return pl.pallas_call(
        kernel,
        out_shape=jax.ShapeDtypeStruct((M, D), a.dtype),
        grid_spec=pl.GridSpec(
            grid=grid,
            in_specs=[spec] * k,
            out_specs=spec,
        ),
        compiler_params=pltpu.CompilerParams(
            dimension_semantics=("parallel",),
            vmem_limit_bytes=_vmem_budget_bytes(),
        ),
        cost_estimate=cost,
    )(*tensors)


def _is_present(x):
    if x is None:
        return False
    if isinstance(x, (list, tuple)) and len(x) == 0:
        return False
    return True


def min_set_forward(embeds1, embeds1_o, embeds2, embeds2_o,
                    embeds3=None, embeds3_o=None):
    """Pallas equivalent of MinSet.forward (manifold / *_o args unused,
    matching the reference implementation)."""
    del embeds1_o, embeds2_o, embeds3_o  # unused in the reference forward
    if _is_present(embeds3):
        return _tiled_min([embeds1, embeds2, embeds3])
    return _tiled_min([embeds1, embeds2])


if __name__ == "__main__":
    key = jax.random.PRNGKey(0)
    k1, k2, k3, k4, k5, k6 = jax.random.split(key, 6)

    # --- small shapes (module-typical): exercises the fused fast path ---
    batch, hidden = 8, 128
    e1 = jax.random.normal(k1, (batch, hidden), dtype=jnp.float32)
    e1_o = jax.random.normal(k2, (batch, hidden), dtype=jnp.float32)
    e2 = jax.random.normal(k3, (batch, hidden), dtype=jnp.float32)
    e2_o = jax.random.normal(k4, (batch, hidden), dtype=jnp.float32)
    e3 = jax.random.normal(k5, (batch, hidden), dtype=jnp.float32)
    e3_o = jax.random.normal(k6, (batch, hidden), dtype=jnp.float32)

    out2 = min_set_forward(e1, e1_o, e2, e2_o)
    jax.block_until_ready(out2)
    assert jnp.allclose(out2, jnp.minimum(e1, e2)), "2-way min mismatch (small)"

    out3 = min_set_forward(e1, e1_o, e2, e2_o, e3, e3_o)
    jax.block_until_ready(out3)
    ref3 = jnp.min(jnp.stack([e1, e2, e3], axis=0), axis=0)
    assert jnp.allclose(out3, ref3), "3-way min mismatch (small)"

    # --- larger batch: exercises the Pallas tiled kernel path (grid >= 2) ---
    big_batch = 1024
    b1 = jax.random.normal(k1, (big_batch, hidden), dtype=jnp.float32)
    b2 = jax.random.normal(k3, (big_batch, hidden), dtype=jnp.float32)
    b3 = jax.random.normal(k5, (big_batch, hidden), dtype=jnp.float32)
    zo = jnp.zeros_like(b1)

    bout2 = min_set_forward(b1, zo, b2, zo)
    jax.block_until_ready(bout2)
    assert jnp.allclose(bout2, jnp.minimum(b1, b2)), "2-way min mismatch (pallas)"

    bout3 = min_set_forward(b1, zo, b2, zo, b3, zo)
    jax.block_until_ready(bout3)
    bref3 = jnp.min(jnp.stack([b1, b2, b3], axis=0), axis=0)
    assert jnp.allclose(bout3, bref3), "3-way min mismatch (pallas)"

    print("KERNEL_OK")
</pallas_src>

<mosaic_0001>
module attributes {stable_mosaic.version = 11 : i64} {
  func.func @_min2_kernel(%arg0: i32, %arg1: memref<512x128xf32, #tpu.memory_space<vmem>>, %arg2: memref<512x128xf32, #tpu.memory_space<vmem>>, %arg3: memref<512x128xf32, #tpu.memory_space<vmem>>) attributes {dimension_semantics = [#tpu.dimension_semantics<parallel>], iteration_bounds = array<i64: 2>, scalar_prefetch = 0 : i64, scratch_operands = 0 : i64, tpu.core_type = #tpu.core_type<tc>, window_params = [{transform_indices = @transform_0, window_bounds = array<i64: 512, 128>}, {transform_indices = @transform_1, window_bounds = array<i64: 512, 128>}, {transform_indices = @transform_2, window_bounds = array<i64: 512, 128>}]} {
    %c0 = arith.constant 0 : index
    %c0_0 = arith.constant 0 : index
    %0 = vector.load %arg1[%c0, %c0_0] : memref<512x128xf32, #tpu.memory_space<vmem>>, vector<512x128xf32>
    %c0_1 = arith.constant 0 : index
    %c0_2 = arith.constant 0 : index
    %1 = vector.load %arg2[%c0_1, %c0_2] : memref<512x128xf32, #tpu.memory_space<vmem>>, vector<512x128xf32>
    %2 = arith.minimumf %0, %1 : vector<512x128xf32>
    %c0_3 = arith.constant 0 : index
    %c0_4 = arith.constant 0 : index
    %3 = vector.load %arg3[%c0_3, %c0_4] : memref<512x128xf32, #tpu.memory_space<vmem>>, vector<512x128xf32>
    tpu.vector_store %arg3[%c0_3, %c0_4], %2 {strides = array<i32>} : memref<512x128xf32, #tpu.memory_space<vmem>>, vector<512x128xf32>,
    return
  }
  func.func @transform_0(%arg0: i32) -> (i32, i32) {
    %c0_i32 = arith.constant 0 : i32
    %c0_i32_0 = arith.constant 0 : i32
    return %arg0, %c0_i32 : i32, i32
  }
  func.func @transform_1(%arg0: i32) -> (i32, i32) {
    %c0_i32 = arith.constant 0 : i32
    %c0_i32_0 = arith.constant 0 : i32
    return %arg0, %c0_i32 : i32, i32
  }
  func.func @transform_2(%arg0: i32) -> (i32, i32) {
    %c0_i32 = arith.constant 0 : i32
    %c0_i32_0 = arith.constant 0 : i32
    return %arg0, %c0_i32 : i32, i32
  }
}

</mosaic_0001>

<bundles_post_ra>
// kernel: tpu_custom_call.1
= control target key start
LH: loop header
LB: loop body
LE: loop exit
PB: predicated region body
PF: predicated region fallthrough
CT: control target
= control target key end

     0   :  { %7 = vsyncpa [#allocation3], 0  ;;  %s1223_s0 = inlined_call_operand.hbm [shape: f32[1024,128], index: 0, kind: input, shape index: {}]   ;;  %s1224_s1 = inlined_call_operand.hbm [shape: f32[1024,128], index: 1, kind: input, shape index: {}]   ;;  %s1225_s2 = inlined_call_operand.hbm [shape: f32[1024,128], index: 2, kind: output, shape index: {}]  }
   0x1   :  { %9 = vsyncpa [#allocation3 + $0x1], 0 }
   0x2   :  { %10 = vsyncpa [#allocation6], 0 }
   0x3   :  { %12 = vsyncpa [#allocation6 + $0x1], 0 }
   0x4   :  { %13 = vsyncpa [#allocation4], 0 }
   0x5   :  { %15 = vsyncpa [#allocation4 + $0x1], 0  ;;  %s801_s9 = smov 0   ;;  %s803_s10 = smov 0  }
   0x6   :  { %s805_s11 = smov 0   ;;  %s807_s12 = smov 0  }
   0x7 LB: > { %s822_s13 = sadd.s32 4294967295, %s777_s12   ;;  %s571_s14 = sadd.s32 4294967294, %s777_s12   ;;  %s777_s12 = sphi %s807_s12, %s1241_s12   ;;  %s773_s11 = sphi %s805_s11, %s1240_s11   ;;  %s769_s10 = sphi %s803_s10, %s1239_s10   ;;  %s765_s9 = sphi %s801_s9, %s1238_s9  }
   0x8   : > { %s826_s15 = sadd.s32 1, %s777_s12   ;;  %s28_s16 = sadd.s32 1, %s773_s11 }
   0x9   : > { %s25_s17 = ssub.s32 %s777_s12, %s826_s15  ;;  %p35_p0 = scmp.ne.s32.totalorder %s773_s11, %s769_s10 }
   0xa   : > { %p26_p1 = scmp.eq.s32.totalorder %s25_s17, 0  ;;  %p36_p2 = scmp.eq.s32.totalorder %s777_s12, 0 }
   0xb   : > { %p41_p3 = scmp.ne.s32.totalorder %s769_s10, %s765_s9  ;;  %p42_p4 = scmp.eq.s32.totalorder %s822_s13, 0 }
   0xc   : > { %s838_s18 = scalar_select %p26_p1, %s773_s11, %s28_s16  }
   0xd   : > { %p840_p5 = por %p36_p2, %p35_p0  ;;  %p844_p6 = por %p42_p4, %p41_p3 }
   0xe   : > { %p91_p7 = scmp.eq.s32.totalorder %s822_s13, 1  ;;  %p97_p8 = scmp.eq.s32.totalorder %s571_s14, 1 }
   0xf   : > { %s1229_s20 = scalar_select %p844_p6, 1, 0 }
  0x10   : > { %p609_p10 = scmp.lt.s32.totalorder %s777_s12, 2  ;;  %p851_p11 = por %p91_p7, %p35_p0 }
  0x11   : > { %p855_p12 = por %p97_p8, %p41_p3  ;;  %s860_s23 = sand.u32 1, %s773_s11  }
  0x12   : > { %s1230_s21 = scalar_select %p851_p11, 1, 0 }
  0x13   : > { %s1231_s22 = scalar_select %p855_p12, 1, 0 }
  0x14   : > { %s589_s24 = sshll.u32 %s777_s12, 13  ;;  %s574_s25 = sshll.u32 %s860_s23, 9 }
  0x15   : > { %s869_s28 = scalar_lea.hbm %s1223_s0, %s589_s24  ;;  %s121_s29 = scalar_lea.vmem [#allocation2], %s574_s25 }
  0x16   : > { %s128_s30 = sshll.u32 %s121_s29, 4  ;;  %p875_p13 = pnand %p609_p10, %p840_p5  ;;  %s879_s30 = int_to_ptr.vmem [resolvable:$true] %s128_s30 }
  0x17   : > { %s118_s4 = scalar_lea.sflag [#allocation3], %s860_s23  ;;  %s647_s5 = scalar_lea.hbm %s869_s28, 8192 }
  0x18   : > { %p648_p0 = scmp.ne.s32.totalorder %s869_s28, %s647_s5  ;;  %p649_p1 = pneg %p875_p13 }
  0x19   : > { %s652_s8 = scalar_lea.hbm %s1223_s0, 16384  ;;  %p653_p4 = scmp.lt.u32.totalorder %s869_s28, %s1223_s0 }
  0x1a   : > { %p650_p2 = pnand %p649_p1, %p648_p0  ;;  %p654_p5 = scmp.lt.u32.totalorder %s652_s8, %s647_s5 }
  0x1b   : > { %p656_p8 = scmp.lt.u32.totalorder %s647_s5, %s869_s28 }
  0x1c   : > { %p651_p3 = pneg %p650_p2  ;;  %p655_p7 = por %p654_p5, %p653_p4 }
  0x1e   : > { %p657_p10 = por %p656_p8, %p655_p7 }
  0x20   : > { %p658_p9 = pnand %p657_p10, %p651_p3 }
  0x22   : > { %661 = shalt.err (!%p658_p9)
}
  0x23   : > { %s662_s17 = scalar_lea.vmem %s879_s30, 8192  ;;  %s779_s19 = smov [#allocation2]  }
  0x24   : > { %p663_p0 = scmp.ne.s32.totalorder %s879_s30, %s662_s17  ;;  %s667_s26 = sshll.u32 %s779_s19, 4  ;;  %s668_s26 = int_to_ptr.vmem [resolvable:$false] %s667_s26 }
  0x25   : > { %s669_s27 = scalar_lea.vmem %s668_s26, 16384  ;;  %p670_p11 = scmp.lt.s32.totalorder %s879_s30, %s668_s26 }
  0x26   : > { %p665_p2 = pnand %p663_p0, %p649_p1  ;;  %p671_p4 = scmp.lt.s32.totalorder %s669_s27, %s662_s17 }
  0x28   : > { %p666_p12 = pneg %p665_p2  ;;  %p672_p5 = por %p671_p4, %p670_p11 }
  0x2a   : > { %p673_p7 = pnand %p672_p5, %p666_p12 }
  0x2c   : > { %676 = shalt.err (!%p673_p7)
}
  0x2d   : > { %s780_s29 = smov 128   ;;  %s781_s5 = smov 8  }
  0x2e   : > { %601 = dma.hbm_to_vmem [thread:$0]  (!%p875_p13), %s869_s28, 8192, %s879_s30, %s118_s4, %s780_s29, %s780_s29, %s781_s5  }
  0x2f   : > { %p580_p9 = scmp.ge.s32.totalorder %s777_s12, 1  ;;  %p157_p11 = scmp.lt.s32.totalorder %s777_s12, 3 }
  0x30   : > { %s923_s14 = scalar_lea.hbm %s1224_s1, %s589_s24  ;;  %s142_s16 = scalar_lea.vmem [#allocation5], %s574_s25 }
  0x31   : > { %p914_p12 = pnand %p580_p9, %p157_p11  ;;  %s149_s17 = sshll.u32 %s142_s16, 4  ;;  %s927_s17 = int_to_ptr.vmem [resolvable:$true] %s149_s17 }
  0x32   : > { %s139_s28 = scalar_lea.sflag [#allocation6], %s860_s23  ;;  %s677_s30 = scalar_lea.hbm %s923_s14, 8192 }
  0x33   : > { %p678_p3 = scmp.ne.s32.totalorder %s923_s14, %s677_s30  ;;  %s682_s24 = scalar_lea.hbm %s1224_s1, 16384 }
  0x34   : > { %p683_p0 = scmp.lt.u32.totalorder %s923_s14, %s1224_s1  ;;  %p684_p2 = scmp.lt.u32.totalorder %s682_s24, %s677_s30 }
  0x35   : > { %p680_p8 = pnand %p678_p3, %p649_p1  ;;  %p686_p5 = scmp.lt.u32.totalorder %s677_s30, %s923_s14 }
  0x36   : > { %p685_p4 = por %p684_p2, %p683_p0 }
  0x37   : > { %p681_p10 = pneg %p680_p8 }
  0x38   : > { %p687_p7 = por %p686_p5, %p685_p4 }
  0x3a   : > { %p688_p9 = pnand %p687_p7, %p681_p10 }
  0x3c   : > { %691 = shalt.err (!%p688_p9)
}
  0x3d   : > { %s692_s25 = scalar_lea.vmem %s927_s17, 8192  ;;  %s782_s7 = smov [#allocation5]  }
  0x3e   : > { %p693_p11 = scmp.ne.s32.totalorder %s927_s17, %s692_s25  ;;  %s697_s8 = sshll.u32 %s782_s7, 4  ;;  %s698_s8 = int_to_ptr.vmem [resolvable:$false] %s697_s8 }
  0x3f   : > { %s699_s16 = scalar_lea.vmem %s698_s8, 16384  ;;  %p700_p6 = scmp.lt.s32.totalorder %s927_s17, %s698_s8 }
  0x40   : > { %p695_p3 = pnand %p693_p11, %p649_p1  ;;  %p701_p0 = scmp.lt.s32.totalorder %s699_s16, %s692_s25 }
  0x42   : > { %p696_p8 = pneg %p695_p3  ;;  %p702_p2 = por %p701_p0, %p700_p6 }
  0x44   : > { %p703_p4 = pnand %p702_p2, %p696_p8 }
  0x46   : > { %706 = shalt.err (!%p703_p4)
}
  0x47   : > { %604 = dma.hbm_to_vmem [thread:$0]  (!%p875_p13), %s923_s14, 8192, %s927_s17, %s139_s28, %s780_s29, %s780_s29, %s781_s5  }
  0x48   : > { %161 = sbr.rel (%p914_p12) target bundleno = 150 (0x96), region = 28  ;;  %s961_s30 = sand.u32 (!%p914_p12), 1, %s769_s10  }
  0x49   : > { %s581_s4 = sshll.u32 (!%p914_p12), %s961_s30, 9  ;;  %s164_s19 = scalar_lea.sflag (!%p914_p12), [#allocation3], %s961_s30 }
  0x4a   : > { %s965_s3 = scalar_lea.vmem (!%p914_p12), [#allocation2], %s581_s4  ;;  %p1234_p6 = scmp.ne.s32.totalorder (!%p914_p12), %s1229_s20, 0 }
  0x4f   : > { %752 = dma.done.wait (%p1234_p6), %s164_s19, 8192  }
  0x50   : > { %754 = vsyncadd (%p1234_p6), %s164_s19, 4294959104  ;;  %s173_s23 = scalar_lea.sflag [#allocation6], %s961_s30  ;;  %s972_s29 = scalar_lea.vmem [#allocation5], %s581_s4 }
  0x51   : > { %756 = dma.done.wait (%p1234_p6), %s173_s23, 8192  }
  0x52   : > { %758 = vsyncadd (%p1234_p6), %s173_s23, 4294959104  ;;  %v205_v0 = vld [vmem:[%s965_s3] sm:$0xff]  ;;  %v206_v2 = vld [vmem:[%s965_s3 + $0x8] sm:$0xff]  ;;  %s987_s20 = scalar_lea.vmem [#allocation7], %s581_s4  ;;  %s591_s5 = sshll.u32 %s822_s13, 13 }
  0x53   : > { %v269_v1 = vld [vmem:[%s972_s29] sm:$0xff]  ;;  %v270_v4 = vld [vmem:[%s972_s29 + $0x8] sm:$0xff]  ;;  %v207_v5 = vld [vmem:[%s965_s3 + $0x10] sm:$0xff]  ;;  %s475_s6 = sshll.u32 %s987_s20, 4  ;;  %s1173_s17 = scalar_lea.hbm %s1225_s2, %s591_s5  ;;  %s1175_s6 = int_to_ptr.vmem [resolvable:$true] %s475_s6 }
  0x54   : > { %v333_v3 = vmin.f32 %v205_v0, %v269_v1  ;;  %v271_v6 = vld [vmem:[%s972_s29 + $0x10] sm:$0xff]  ;;  %v334_v7 = vmin.f32 %v206_v2, %v270_v4  ;;  %v208_v9 = vld [vmem:[%s965_s3 + $0x18] sm:$0xff]  ;;  %v209_v11 = vld [vmem:[%s965_s3 + $0x20] sm:$0xff]  ;;  %s462_s28 = scalar_lea.sflag [#allocation4], %s961_s30  ;;  %s707_s24 = scalar_lea.vmem %s1175_s6, 8192 }
  0x55   : > { %v335_v8 = vmin.f32 %v207_v5, %v271_v6  ;;  %v272_v10 = vld [vmem:[%s972_s29 + $0x18] sm:$0xff]  ;;  %v273_v13 = vld [vmem:[%s972_s29 + $0x20] sm:$0xff]  ;;  %v210_v14 = vld [vmem:[%s965_s3 + $0x28] sm:$0xff]  ;;  %p708_p13 = scmp.ne.s32.totalorder %s1175_s6, %s707_s24  ;;  %p1235_p1 = scmp.ne.s32.totalorder %s1230_s21, 0 }
  0x56   : > { %397 = vst [vmem:[%s987_s20] sm:$0xff] %v333_v3  ;;  %v336_v12 = vmin.f32 %v208_v9, %v272_v10  ;;  %v274_v15 = vld [vmem:[%s972_s29 + $0x28] sm:$0xff]  ;;  %398 = vst [vmem:[%s987_s20 + $0x8] sm:$0xff] %v334_v7  ;;  %v337_v16 = vmin.f32 %v209_v11, %v273_v13  ;;  %v211_v18 = vld [vmem:[%s965_s3 + $0x30] sm:$0xff]  ;;  %s783_s26 = smov [#allocation7]  }
  0x57   : > { %399 = vst [vmem:[%s987_s20 + $0x10] sm:$0xff] %v335_v8  ;;  %v338_v17 = vmin.f32 %v210_v14, %v274_v15  ;;  %v275_v19 = vld [vmem:[%s972_s29 + $0x30] sm:$0xff]  ;;  %v212_v20 = vld [vmem:[%s965_s3 + $0x38] sm:$0xff]  ;;  %v213_v23 = vld [vmem:[%s965_s3 + $0x40] sm:$0xff]  ;;  %p709_p12 = pnand %p708_p13, %p1235_p1  ;;  %s711_s27 = sshll.u32 %s783_s26, 4  ;;  %s712_s27 = int_to_ptr.vmem [resolvable:$false] %s711_s27 }
  0x58   : > { %400 = vst [vmem:[%s987_s20 + $0x18] sm:$0xff] %v336_v12  ;;  %v339_v21 = vmin.f32 %v211_v18, %v275_v19  ;;  %v276_v22 = vld [vmem:[%s972_s29 + $0x38] sm:$0xff]  ;;  %v277_v24 = vld [vmem:[%s972_s29 + $0x40] sm:$0xff]  ;;  %401 = vst [vmem:[%s987_s20 + $0x20] sm:$0xff] %v337_v16  ;;  %s713_s25 = scalar_lea.vmem %s712_s27, 16384  ;;  %p714_p5 = scmp.lt.s32.totalorder %s1175_s6, %s712_s27 }
  0x59   : > { %402 = vst [vmem:[%s987_s20 + $0x28] sm:$0xff] %v338_v17  ;;  %v340_v25 = vmin.f32 %v212_v20, %v276_v22  ;;  %v341_v26 = vmin.f32 %v213_v23, %v277_v24  ;;  %v214_v27 = vld [vmem:[%s965_s3 + $0x48] sm:$0xff]  ;;  %v215_v29 = vld [vmem:[%s965_s3 + $0x50] sm:$0xff]  ;;  %v216_v32 = vld [vmem:[%s965_s3 + $0x58] sm:$0xff]  ;;  %p710_p10 = pneg %p709_p12  ;;  %p715_p7 = scmp.lt.s32.totalorder %s713_s25, %s707_s24 }
  0x5a   : > { %v278_v28 = vld [vmem:[%s972_s29 + $0x48] sm:$0xff]  ;;  %403 = vst [vmem:[%s987_s20 + $0x30] sm:$0xff] %v339_v21  ;;  %v279_v31 = vld [vmem:[%s972_s29 + $0x50] sm:$0xff]  ;;  %v280_v33 = vld [vmem:[%s972_s29 + $0x58] sm:$0xff] }
  0x5b   : > { %v342_v30 = vmin.f32 %v214_v27, %v278_v28  ;;  %404 = vst [vmem:[%s987_s20 + $0x38] sm:$0xff] %v340_v25  ;;  %405 = vst [vmem:[%s987_s20 + $0x40] sm:$0xff] %v341_v26  ;;  %v343_v34 = vmin.f32 %v215_v29, %v279_v31  ;;  %v344_v35 = vmin.f32 %v216_v32, %v280_v33  ;;  %v217_v36 = vld [vmem:[%s965_s3 + $0x60] sm:$0xff]  ;;  %v218_v38 = vld [vmem:[%s965_s3 + $0x68] sm:$0xff]  ;;  %p716_p9 = por %p715_p7, %p714_p5 }
  0x5c   : > { %v281_v37 = vld [vmem:[%s972_s29 + $0x60] sm:$0xff]  ;;  %v282_v40 = vld [vmem:[%s972_s29 + $0x68] sm:$0xff]  ;;  %v219_v41 = vld [vmem:[%s965_s3 + $0x70] sm:$0xff] }
  0x5d   : > { %406 = vst [vmem:[%s987_s20 + $0x48] sm:$0xff] %v342_v30  ;;  %v345_v39 = vmin.f32 %v217_v36, %v281_v37  ;;  %v283_v42 = vld [vmem:[%s972_s29 + $0x70] sm:$0xff]  ;;  %407 = vst [vmem:[%s987_s20 + $0x50] sm:$0xff] %v343_v34  ;;  %v346_v43 = vmin.f32 %v218_v38, %v282_v40  ;;  %v220_v45 = vld [vmem:[%s965_s3 + $0x78] sm:$0xff]  ;;  %p717_p11 = pnand %p716_p9, %p710_p10 }
  0x5e   : > { %408 = vst [vmem:[%s987_s20 + $0x58] sm:$0xff] %v344_v35  ;;  %v347_v44 = vmin.f32 %v219_v41, %v283_v42  ;;  %v284_v46 = vld [vmem:[%s972_s29 + $0x78] sm:$0xff]  ;;  %v221_v47 = vld [vmem:[%s965_s3 + $0x80] sm:$0xff]  ;;  %v222_v50 = vld [vmem:[%s965_s3 + $0x88] sm:$0xff] }
  0x5f   : > { %409 = vst [vmem:[%s987_s20 + $0x60] sm:$0xff] %v345_v39  ;;  %v348_v48 = vmin.f32 %v220_v45, %v284_v46  ;;  %v285_v49 = vld [vmem:[%s972_s29 + $0x80] sm:$0xff]  ;;  %v286_v51 = vld [vmem:[%s972_s29 + $0x88] sm:$0xff]  ;;  %410 = vst [vmem:[%s987_s20 + $0x68] sm:$0xff] %v346_v43 }
  0x60   : > { %411 = vst [vmem:[%s987_s20 + $0x70] sm:$0xff] %v347_v44  ;;  %v349_v52 = vmin.f32 %v221_v47, %v285_v49  ;;  %v350_v53 = vmin.f32 %v222_v50, %v286_v51  ;;  %v223_v54 = vld [vmem:[%s965_s3 + $0x90] sm:$0xff]  ;;  %v224_v56 = vld [vmem:[%s965_s3 + $0x98] sm:$0xff]  ;;  %v225_v59 = vld [vmem:[%s965_s3 + $0xa0] sm:$0xff] }
  0x61   : > { %v287_v55 = vld [vmem:[%s972_s29 + $0x90] sm:$0xff]  ;;  %412 = vst [vmem:[%s987_s20 + $0x78] sm:$0xff] %v348_v48  ;;  %v288_v58 = vld [vmem:[%s972_s29 + $0x98] sm:$0xff]  ;;  %v289_v60 = vld [vmem:[%s972_s29 + $0xa0] sm:$0xff] }
  0x62   : > { %v351_v57 = vmin.f32 %v223_v54, %v287_v55  ;;  %413 = vst [vmem:[%s987_s20 + $0x80] sm:$0xff] %v349_v52  ;;  %414 = vst [vmem:[%s987_s20 + $0x88] sm:$0xff] %v350_v53  ;;  %v352_v61 = vmin.f32 %v224_v56, %v288_v58  ;;  %v353_v62 = vmin.f32 %v225_v59, %v289_v60  ;;  %v226_v63 = vld [vmem:[%s965_s3 + $0xa8] sm:$0xff]  ;;  %v227_v1 = vld [vmem:[%s965_s3 + $0xb0] sm:$0xff] }
  0x63   : > { %v290_v0 = vld [vmem:[%s972_s29 + $0xa8] sm:$0xff]  ;;  %v291_v3 = vld [vmem:[%s972_s29 + $0xb0] sm:$0xff]  ;;  %v228_v4 = vld [vmem:[%s965_s3 + $0xb8] sm:$0xff] }
  0x64   : > { %415 = vst [vmem:[%s987_s20 + $0x90] sm:$0xff] %v351_v57  ;;  %v354_v2 = vmin.f32 %v226_v63, %v290_v0  ;;  %v292_v5 = vld [vmem:[%s972_s29 + $0xb8] sm:$0xff]  ;;  %416 = vst [vmem:[%s987_s20 + $0x98] sm:$0xff] %v352_v61  ;;  %v355_v6 = vmin.f32 %v227_v1, %v291_v3  ;;  %v229_v8 = vld [vmem:[%s965_s3 + $0xc0] sm:$0xff] }
  0x65   : > { %417 = vst [vmem:[%s987_s20 + $0xa0] sm:$0xff] %v353_v62  ;;  %v356_v7 = vmin.f32 %v228_v4, %v292_v5  ;;  %v293_v9 = vld [vmem:[%s972_s29 + $0xc0] sm:$0xff]  ;;  %v230_v10 = vld [vmem:[%s965_s3 + $0xc8] sm:$0xff]  ;;  %v231_v13 = vld [vmem:[%s965_s3 + $0xd0] sm:$0xff] }
  0x66   : > { %418 = vst [vmem:[%s987_s20 + $0xa8] sm:$0xff] %v354_v2  ;;  %v357_v11 = vmin.f32 %v229_v8, %v293_v9  ;;  %v294_v12 = vld [vmem:[%s972_s29 + $0xc8] sm:$0xff]  ;;  %v295_v14 = vld [vmem:[%s972_s29 + $0xd0] sm:$0xff]  ;;  %419 = vst [vmem:[%s987_s20 + $0xb0] sm:$0xff] %v355_v6 }
  0x67   : > { %420 = vst [vmem:[%s987_s20 + $0xb8] sm:$0xff] %v356_v7  ;;  %v358_v15 = vmin.f32 %v230_v10, %v294_v12  ;;  %v359_v16 = vmin.f32 %v231_v13, %v295_v14  ;;  %v232_v17 = vld [vmem:[%s965_s3 + $0xd8] sm:$0xff]  ;;  %v233_v19 = vld [vmem:[%s965_s3 + $0xe0] sm:$0xff]  ;;  %v234_v22 = vld [vmem:[%s965_s3 + $0xe8] sm:$0xff] }
  0x68   : > { %v296_v18 = vld [vmem:[%s972_s29 + $0xd8] sm:$0xff]  ;;  %421 = vst [vmem:[%s987_s20 + $0xc0] sm:$0xff] %v357_v11  ;;  %v297_v21 = vld [vmem:[%s972_s29 + $0xe0] sm:$0xff]  ;;  %v298_v23 = vld [vmem:[%s972_s29 + $0xe8] sm:$0xff] }
  0x69   : > { %v360_v20 = vmin.f32 %v232_v17, %v296_v18  ;;  %422 = vst [vmem:[%s987_s20 + $0xc8] sm:$0xff] %v358_v15  ;;  %423 = vst [vmem:[%s987_s20 + $0xd0] sm:$0xff] %v359_v16  ;;  %v361_v24 = vmin.f32 %v233_v19, %v297_v21  ;;  %v362_v25 = vmin.f32 %v234_v22, %v298_v23  ;;  %v235_v26 = vld [vmem:[%s965_s3 + $0xf0] sm:$0xff]  ;;  %v236_v28 = vld [vmem:[%s965_s3 + $0xf8] sm:$0xff] }
  0x6a   : > { %v299_v27 = vld [vmem:[%s972_s29 + $0xf0] sm:$0xff]  ;;  %v300_v30 = vld [vmem:[%s972_s29 + $0xf8] sm:$0xff]  ;;  %v237_v31 = vld [vmem:[%s965_s3 + $0x100] sm:$0xff] }
  0x6b   : > { %424 = vst [vmem:[%s987_s20 + $0xd8] sm:$0xff] %v360_v20  ;;  %v363_v29 = vmin.f32 %v235_v26, %v299_v27  ;;  %v301_v32 = vld [vmem:[%s972_s29 + $0x100] sm:$0xff]  ;;  %425 = vst [vmem:[%s987_s20 + $0xe0] sm:$0xff] %v361_v24  ;;  %v364_v33 = vmin.f32 %v236_v28, %v300_v30  ;;  %v238_v35 = vld [vmem:[%s965_s3 + $0x108] sm:$0xff] }
  0x6c   : > { %426 = vst [vmem:[%s987_s20 + $0xe8] sm:$0xff] %v362_v25  ;;  %v365_v34 = vmin.f32 %v237_v31, %v301_v32  ;;  %v302_v36 = vld [vmem:[%s972_s29 + $0x108] sm:$0xff]  ;;  %v239_v37 = vld [vmem:[%s965_s3 + $0x110] sm:$0xff]  ;;  %v240_v40 = vld [vmem:[%s965_s3 + $0x118] sm:$0xff] }
  0x6d   : > { %427 = vst [vmem:[%s987_s20 + $0xf0] sm:$0xff] %v363_v29  ;;  %v366_v38 = vmin.f32 %v238_v35, %v302_v36  ;;  %v303_v39 = vld [vmem:[%s972_s29 + $0x110] sm:$0xff]  ;;  %v304_v41 = vld [vmem:[%s972_s29 + $0x118] sm:$0xff]  ;;  %428 = vst [vmem:[%s987_s20 + $0xf8] sm:$0xff] %v364_v33 }
  0x6e   : > { %429 = vst [vmem:[%s987_s20 + $0x100] sm:$0xff] %v365_v34  ;;  %v367_v42 = vmin.f32 %v239_v37, %v303_v39  ;;  %v368_v43 = vmin.f32 %v240_v40, %v304_v41  ;;  %v241_v44 = vld [vmem:[%s965_s3 + $0x120] sm:$0xff]  ;;  %v242_v46 = vld [vmem:[%s965_s3 + $0x128] sm:$0xff]  ;;  %v243_v49 = vld [vmem:[%s965_s3 + $0x130] sm:$0xff] }
  0x6f   : > { %v305_v45 = vld [vmem:[%s972_s29 + $0x120] sm:$0xff]  ;;  %430 = vst [vmem:[%s987_s20 + $0x108] sm:$0xff] %v366_v38  ;;  %v306_v48 = vld [vmem:[%s972_s29 + $0x128] sm:$0xff]  ;;  %v307_v50 = vld [vmem:[%s972_s29 + $0x130] sm:$0xff] }
  0x70   : > { %v369_v47 = vmin.f32 %v241_v44, %v305_v45  ;;  %431 = vst [vmem:[%s987_s20 + $0x110] sm:$0xff] %v367_v42  ;;  %432 = vst [vmem:[%s987_s20 + $0x118] sm:$0xff] %v368_v43  ;;  %v370_v51 = vmin.f32 %v242_v46, %v306_v48  ;;  %v371_v52 = vmin.f32 %v243_v49, %v307_v50  ;;  %v244_v53 = vld [vmem:[%s965_s3 + $0x138] sm:$0xff]  ;;  %v245_v55 = vld [vmem:[%s965_s3 + $0x140] sm:$0xff] }
  0x71   : > { %v308_v54 = vld [vmem:[%s972_s29 + $0x138] sm:$0xff]  ;;  %v309_v57 = vld [vmem:[%s972_s29 + $0x140] sm:$0xff]  ;;  %v246_v58 = vld [vmem:[%s965_s3 + $0x148] sm:$0xff] }
  0x72   : > { %433 = vst [vmem:[%s987_s20 + $0x120] sm:$0xff] %v369_v47  ;;  %v372_v56 = vmin.f32 %v244_v53, %v308_v54  ;;  %v310_v59 = vld [vmem:[%s972_s29 + $0x148] sm:$0xff]  ;;  %434 = vst [vmem:[%s987_s20 + $0x128] sm:$0xff] %v370_v51  ;;  %v373_v60 = vmin.f32 %v245_v55, %v309_v57  ;;  %v247_v62 = vld [vmem:[%s965_s3 + $0x150] sm:$0xff] }
  0x73   : > { %435 = vst [vmem:[%s987_s20 + $0x130] sm:$0xff] %v371_v52  ;;  %v374_v61 = vmin.f32 %v246_v58, %v310_v59  ;;  %v311_v63 = vld [vmem:[%s972_s29 + $0x150] sm:$0xff]  ;;  %v248_v0 = vld [vmem:[%s965_s3 + $0x158] sm:$0xff]  ;;  %v249_v3 = vld [vmem:[%s965_s3 + $0x160] sm:$0xff] }
  0x74   : > { %436 = vst [vmem:[%s987_s20 + $0x138] sm:$0xff] %v372_v56  ;;  %v375_v1 = vmin.f32 %v247_v62, %v311_v63  ;;  %v312_v2 = vld [vmem:[%s972_s29 + $0x158] sm:$0xff]  ;;  %v313_v4 = vld [vmem:[%s972_s29 + $0x160] sm:$0xff]  ;;  %437 = vst [vmem:[%s987_s20 + $0x140] sm:$0xff] %v373_v60 }
  0x75   : > { %438 = vst [vmem:[%s987_s20 + $0x148] sm:$0xff] %v374_v61  ;;  %v376_v5 = vmin.f32 %v248_v0, %v312_v2  ;;  %v377_v6 = vmin.f32 %v249_v3, %v313_v4  ;;  %v250_v7 = vld [vmem:[%s965_s3 + $0x168] sm:$0xff]  ;;  %v251_v9 = vld [vmem:[%s965_s3 + $0x170] sm:$0xff]  ;;  %v252_v12 = vld [vmem:[%s965_s3 + $0x178] sm:$0xff] }
  0x76   : > { %v314_v8 = vld [vmem:[%s972_s29 + $0x168] sm:$0xff]  ;;  %439 = vst [vmem:[%s987_s20 + $0x150] sm:$0xff] %v375_v1  ;;  %v315_v11 = vld [vmem:[%s972_s29 + $0x170] sm:$0xff]  ;;  %v316_v13 = vld [vmem:[%s972_s29 + $0x178] sm:$0xff] }
  0x77   : > { %v378_v10 = vmin.f32 %v250_v7, %v314_v8  ;;  %440 = vst [vmem:[%s987_s20 + $0x158] sm:$0xff] %v376_v5  ;;  %441 = vst [vmem:[%s987_s20 + $0x160] sm:$0xff] %v377_v6  ;;  %v379_v14 = vmin.f32 %v251_v9, %v315_v11  ;;  %v380_v15 = vmin.f32 %v252_v12, %v316_v13  ;;  %v253_v16 = vld [vmem:[%s965_s3 + $0x180] sm:$0xff]  ;;  %v254_v18 = vld [vmem:[%s965_s3 + $0x188] sm:$0xff] }
  0x78   : > { %v317_v17 = vld [vmem:[%s972_s29 + $0x180] sm:$0xff]  ;;  %v318_v20 = vld [vmem:[%s972_s29 + $0x188] sm:$0xff]  ;;  %v255_v21 = vld [vmem:[%s965_s3 + $0x190] sm:$0xff] }
  0x79   : > { %442 = vst [vmem:[%s987_s20 + $0x168] sm:$0xff] %v378_v10  ;;  %v381_v19 = vmin.f32 %v253_v16, %v317_v17  ;;  %v319_v22 = vld [vmem:[%s972_s29 + $0x190] sm:$0xff]  ;;  %443 = vst [vmem:[%s987_s20 + $0x170] sm:$0xff] %v379_v14  ;;  %v382_v23 = vmin.f32 %v254_v18, %v318_v20  ;;  %v256_v25 = vld [vmem:[%s965_s3 + $0x198] sm:$0xff] }
  0x7a   : > { %444 = vst [vmem:[%s987_s20 + $0x178] sm:$0xff] %v380_v15  ;;  %v383_v24 = vmin.f32 %v255_v21, %v319_v22  ;;  %v320_v26 = vld [vmem:[%s972_s29 + $0x198] sm:$0xff]  ;;  %v257_v27 = vld [vmem:[%s965_s3 + $0x1a0] sm:$0xff]  ;;  %v258_v30 = vld [vmem:[%s965_s3 + $0x1a8] sm:$0xff] }
  0x7b   : > { %445 = vst [vmem:[%s987_s20 + $0x180] sm:$0xff] %v381_v19  ;;  %v384_v28 = vmin.f32 %v256_v25, %v320_v26  ;;  %v321_v29 = vld [vmem:[%s972_s29 + $0x1a0] sm:$0xff]  ;;  %v322_v31 = vld [vmem:[%s972_s29 + $0x1a8] sm:$0xff]  ;;  %446 = vst [vmem:[%s987_s20 + $0x188] sm:$0xff] %v382_v23 }
  0x7c   : > { %447 = vst [vmem:[%s987_s20 + $0x190] sm:$0xff] %v383_v24  ;;  %v385_v32 = vmin.f32 %v257_v27, %v321_v29  ;;  %v386_v33 = vmin.f32 %v258_v30, %v322_v31  ;;  %v259_v34 = vld [vmem:[%s965_s3 + $0x1b0] sm:$0xff]  ;;  %v260_v36 = vld [vmem:[%s965_s3 + $0x1b8] sm:$0xff]  ;;  %v261_v39 = vld [vmem:[%s965_s3 + $0x1c0] sm:$0xff] }
  0x7d   : > { %v323_v35 = vld [vmem:[%s972_s29 + $0x1b0] sm:$0xff]  ;;  %448 = vst [vmem:[%s987_s20 + $0x198] sm:$0xff] %v384_v28  ;;  %v324_v38 = vld [vmem:[%s972_s29 + $0x1b8] sm:$0xff]  ;;  %v325_v40 = vld [vmem:[%s972_s29 + $0x1c0] sm:$0xff] }
  0x7e   : > { %v387_v37 = vmin.f32 %v259_v34, %v323_v35  ;;  %449 = vst [vmem:[%s987_s20 + $0x1a0] sm:$0xff] %v385_v32  ;;  %450 = vst [vmem:[%s987_s20 + $0x1a8] sm:$0xff] %v386_v33  ;;  %v388_v41 = vmin.f32 %v260_v36, %v324_v38  ;;  %v389_v42 = vmin.f32 %v261_v39, %v325_v40  ;;  %v262_v43 = vld [vmem:[%s965_s3 + $0x1c8] sm:$0xff]  ;;  %v263_v45 = vld [vmem:[%s965_s3 + $0x1d0] sm:$0xff] }
  0x7f   : > { %v326_v44 = vld [vmem:[%s972_s29 + $0x1c8] sm:$0xff]  ;;  %v327_v47 = vld [vmem:[%s972_s29 + $0x1d0] sm:$0xff]  ;;  %v264_v48 = vld [vmem:[%s965_s3 + $0x1d8] sm:$0xff] }
  0x80   : > { %451 = vst [vmem:[%s987_s20 + $0x1b0] sm:$0xff] %v387_v37  ;;  %v390_v46 = vmin.f32 %v262_v43, %v326_v44  ;;  %v328_v49 = vld [vmem:[%s972_s29 + $0x1d8] sm:$0xff]  ;;  %452 = vst [vmem:[%s987_s20 + $0x1b8] sm:$0xff] %v388_v41  ;;  %v391_v50 = vmin.f32 %v263_v45, %v327_v47  ;;  %v265_v52 = vld [vmem:[%s965_s3 + $0x1e0] sm:$0xff] }
  0x81   : > { %453 = vst [vmem:[%s987_s20 + $0x1c0] sm:$0xff] %v389_v42  ;;  %v392_v51 = vmin.f32 %v264_v48, %v328_v49  ;;  %v329_v53 = vld [vmem:[%s972_s29 + $0x1e0] sm:$0xff]  ;;  %v266_v54 = vld [vmem:[%s965_s3 + $0x1e8] sm:$0xff]  ;;  %v267_v57 = vld [vmem:[%s965_s3 + $0x1f0] sm:$0xff] }
  0x82   : > { %454 = vst [vmem:[%s987_s20 + $0x1c8] sm:$0xff] %v390_v46  ;;  %v393_v55 = vmin.f32 %v265_v52, %v329_v53  ;;  %v330_v56 = vld [vmem:[%s972_s29 + $0x1e8] sm:$0xff]  ;;  %v331_v58 = vld [vmem:[%s972_s29 + $0x1f0] sm:$0xff]  ;;  %455 = vst [vmem:[%s987_s20 + $0x1d0] sm:$0xff] %v391_v50 }
  0x83   : > { %456 = vst [vmem:[%s987_s20 + $0x1d8] sm:$0xff] %v392_v51  ;;  %v394_v59 = vmin.f32 %v266_v54, %v330_v56  ;;  %v395_v60 = vmin.f32 %v267_v57, %v331_v58  ;;  %v268_v61 = vld [vmem:[%s965_s3 + $0x1f8] sm:$0xff] }
  0x84   : > { %v332_v62 = vld [vmem:[%s972_s29 + $0x1f8] sm:$0xff]  ;;  %457 = vst [vmem:[%s987_s20 + $0x1e0] sm:$0xff] %v393_v55 }
  0x85   : > { %v396_v63 = vmin.f32 %v268_v61, %v332_v62  ;;  %458 = vst [vmem:[%s987_s20 + $0x1e8] sm:$0xff] %v394_v59  ;;  %459 = vst [vmem:[%s987_s20 + $0x1f0] sm:$0xff] %v395_v60 }
  0x87   : > { %460 = vst [vmem:[%s987_s20 + $0x1f8] sm:$0xff] %v396_v63 }
  0x88   : > { %720 = shalt.err (!%p717_p11)
}
  0x89   : > { %s721_s7 = scalar_lea.hbm %s1173_s17, 8192  ;;  %s725_s4 = scalar_lea.hbm %s1225_s2, 16384 }
  0x8a   : > { %p722_p3 = scmp.ne.s32.totalorder %s1173_s17, %s721_s7  ;;  %p726_p2 = scmp.lt.u32.totalorder %s1173_s17, %s1225_s2 }
  0x8b   : > { %p727_p4 = scmp.lt.u32.totalorder %s725_s4, %s721_s7  ;;  %p729_p13 = scmp.lt.u32.totalorder %s721_s7, %s1173_s17 }
  0x8c   : > { %p723_p8 = pnand %p722_p3, %p1235_p1 }
  0x8d   : > { %p728_p6 = por %p727_p4, %p726_p2 }
  0x8e   : > { %p724_p0 = pneg %p723_p8 }
  0x8f   : > { %p730_p12 = por %p729_p13, %p728_p6 }
  0x91   : > { %p731_p10 = pnand %p730_p12, %p724_p0 }
  0x93   : > { %734 = shalt.err (!%p731_p10)
}
  0x94   : > { %s784_s23 = smov 128   ;;  %s785_s29 = smov 8  }
  0x95   : > { %596 = dma.vmem_to_hbm [thread:$0]  (%p1235_p1), %s1175_s6, 8192, %s1173_s17, %s462_s28, %s784_s23, %s784_s23, %s785_s29  }
  0x96 PF: > { %s490_s20 = sand.u32 1, %s765_s9   ;;  %p1236_p5 = scmp.ne.s32.totalorder %s1231_s22, 0 }
  0x97   : > { %p1237_p7 = scmp.ge.s32.totalorder %s777_s12, 2  ;;  %s491_s5 = scalar_lea.sflag [#allocation4], %s490_s20 }
  0x99   : > { %p606_p9 = pnand %p1237_p7, %p1236_p5 }
  0x9b   : > { %760 = dma.done.wait (!%p606_p9), %s491_s5, 8192  }
  0x9c   : > { %762 = vsyncadd (!%p606_p9), %s491_s5, 4294959104  ;;  %p18_p11 = scmp.ge.s32.totalorder %s826_s15, 4   ;;  %s1238_s9 = smov %s769_s10 }
  0x9d   : > { %s1239_s10 = smov %s773_s11  ;;  %s1240_s11 = smov %s838_s18 }
  0x9e   : > { %s1241_s12 = smov %s826_s15  ;;  %20 = sbr.rel (!%p18_p11) target bundleno = 7 (0x7), region = 86 }
  0xa5   :  { %496 = vsyncpa [#allocation3], 1 }
  0xa6   :  { %498 = vsyncpa [#allocation3 + $0x1], 1 }
  0xa7   :  { %499 = vsyncpa [#allocation6], 1 }
  0xa8   :  { %501 = vsyncpa [#allocation6 + $0x1], 1 }
  0xa9   :  { %502 = vsyncpa [#allocation4], 1 }
  0xaa   :  { %504 = vsyncpa [#allocation4 + $0x1], 1 }

</bundles_post_ra>
